<compile_context>
chip_gen: v5e
topology: v5e:2x2
jax: 0.10.0
libtpu: 0.0.40
codegen_flags: <defaults>
</compile_context>

<pallas_src>
import functools

import jax
import jax.numpy as jnp
from jax import lax
from jax.experimental import pallas as pl
from jax.experimental.pallas import tpu as pltpu


# Set False to get an exact-division softmax path for tight allclose checks
# against an f32 reference (approx reciprocal deviates slightly).
_APPROX_SOFTMAX_RECIP = True

# Per-layer stacked weights, in kernel-argument order.
_BLOCK_KEYS = ("ln1w", "ln1b", "wqkv", "wo", "bo",
               "ln2w", "ln2b", "w1", "b1", "w2", "b2")


@functools.lru_cache(maxsize=None)
def _vmem_limit_bytes():
    # Re-derive VMEM budget per chip generation: v7x has 64 MiB physical
    # (cap ~48 MiB), v5e/v6e have 128 MiB (cap ~96 MiB).  Leave headroom for
    # the double-buffered weight stream.
    try:
        cap = pltpu.get_tpu_info().vmem_capacity_bytes
        return int(min(cap * 3 // 4, 100 * 1024 * 1024))
    except Exception:
        return 48 * 1024 * 1024


def _compiler_params(dimension_semantics):
    return pltpu.CompilerParams(dimension_semantics=dimension_semantics,
                                vmem_limit_bytes=_vmem_limit_bytes())


# ----------------------------------------------------------------------------
# In-kernel helpers (f32 math; bf16 only at MXU operand boundaries)
# ----------------------------------------------------------------------------
def _layernorm(x, w, b, eps=1e-5):
    mu = jnp.mean(x, axis=-1, keepdims=True)
    var = jnp.mean(jnp.square(x - mu), axis=-1, keepdims=True)
    return (x - mu) * lax.rsqrt(var + eps) * w + b


def _softmax_lastdim(s):
    s = s - jnp.max(s, axis=-1, keepdims=True)      # stable softmax, f32
    e = jnp.exp(s)
    denom = jnp.sum(e, axis=-1, keepdims=True)
    if _APPROX_SOFTMAX_RECIP:
        return e * pl.reciprocal(denom, approx=True)    # EUP slot
    return e / denom


def _mhsa(x, ln_w, ln_b, w_qkv, w_out, b_out, heads, dim_head, scale):
    """Per-sample multi-head self-attention.  x: (N, D) f32.

    Q/K/V come from ONE fused (N,D)x(D,3*H*dh) matmul and the output
    projection is ONE (N,H*dh)x(H*dh,D) matmul (full-width MXU fill, no
    activation broadcast, no per-head head-sum).  Only the inherently
    per-head (N,dh)/(N,N) score & PV matmuls run in a static head loop.
    """
    inner = heads * dim_head
    h = _layernorm(x, ln_w, ln_b)
    qkv = jnp.dot(h.astype(jnp.bfloat16), w_qkv,
                  preferred_element_type=jnp.float32)            # (N, 3*inner)
    ctx_parts = []
    for hd in range(heads):
        lo = hd * dim_head
        q = qkv[:, lo:lo + dim_head] * scale                     # scale folded into q
        k = qkv[:, inner + lo:inner + lo + dim_head]
        v = qkv[:, 2 * inner + lo:2 * inner + lo + dim_head]
        s = lax.dot_general(q.astype(jnp.bfloat16), k.astype(jnp.bfloat16),
                            (((1,), (1,)), ((), ())),
                            preferred_element_type=jnp.float32)  # (N, N)
        p = _softmax_lastdim(s)
        ctx_parts.append(jnp.dot(p.astype(jnp.bfloat16), v.astype(jnp.bfloat16),
                                 preferred_element_type=jnp.float32))
    ctx = jnp.concatenate(ctx_parts, axis=-1)                    # (N, inner)
    return jnp.dot(ctx.astype(jnp.bfloat16), w_out,
                   preferred_element_type=jnp.float32) + b_out   # (N, D)


def _mlp(x, ln_w, ln_b, w1, b1, w2, b2):
    h = _layernorm(x, ln_w, ln_b)
    h = jnp.dot(h.astype(jnp.bfloat16), w1, preferred_element_type=jnp.float32) + b1
    h = jax.nn.gelu(h, approximate=False)                        # exact GELU == nn.GELU()
    h = jnp.dot(h.astype(jnp.bfloat16), w2, preferred_element_type=jnp.float32) + b2
    return h


def _block(x, refs, heads, dim_head, scale):
    ln1w, ln1b, wqkv, wo, bo, ln2w, ln2b, w1, b1, w2, b2 = refs
    x = x + _mhsa(x, ln1w[0], ln1b[0], wqkv[0], wo[0], bo[0], heads, dim_head, scale)
    x = x + _mlp(x, ln2w[0], ln2b[0], w1[0], b1[0], w2[0], b2[0])
    return x


# ----------------------------------------------------------------------------
# Pallas kernels
# ----------------------------------------------------------------------------
def patch_embed_kernel(x_ref, w_ref, b_ref, pos_ref, o_ref):
    # grid=(B,): one sample per step; pos passed once as (L, dim) (no HBM
    # batch-broadcast); bias + pos add fused into the embed matmul epilogue.
    y = jnp.dot(x_ref[0].astype(jnp.bfloat16), w_ref[...],
                preferred_element_type=jnp.float32)
    o_ref[0] = (y + b_ref[...] + pos_ref[...]).astype(o_ref.dtype)


def encoder_kernel(x_ref,
                   ln1w, ln1b, wqkv, wo, bo, ln2w, ln2b, w1, b1, w2, b2,
                   nw, nb, dew, deb,
                   o_ref, xs_ref, *, depth, heads, dim_head, scale):
    # grid=(B, depth): batch "parallel" (both v7x TCs), layers "arbitrary".
    # Per-layer weights are streamed (one layer resident at a time, double
    # buffered); activations carried in the xs_ref VMEM scratch.
    layer = pl.program_id(1)

    @pl.when(layer == 0)
    def _():
        xs_ref[...] = x_ref[0].astype(jnp.float32)

    x = _block(xs_ref[...],
               (ln1w, ln1b, wqkv, wo, bo, ln2w, ln2b, w1, b1, w2, b2),
               heads, dim_head, scale)
    xs_ref[...] = x

    @pl.when(layer == depth - 1)
    def _():
        y = _layernorm(x, nw[...], nb[...])                       # encoder final LN
        y = jnp.dot(y.astype(jnp.bfloat16), dew[...],             # fused decoder_embed
                    preferred_element_type=jnp.float32) + deb[...]
        o_ref[0] = y.astype(o_ref.dtype)                          # bf16 latent


def decoder_kernel(x_ref, pos_ref, tgt_ref, msk_ref,
                   ln1w, ln1b, wqkv, wo, bo, ln2w, ln2b, w1, b1, w2, b2,
                   nw, nb, pw, pb,
                   pred_ref, num_ref, xs_ref,
                   *, depth, heads, dim_head, scale, pred_dim):
    layer = pl.program_id(1)

    @pl.when(layer == 0)
    def _():
        xs_ref[...] = x_ref[0].astype(jnp.float32) + pos_ref[...]   # decoder pos add

    x = _block(xs_ref[...],
               (ln1w, ln1b, wqkv, wo, bo, ln2w, ln2b, w1, b1, w2, b2),
               heads, dim_head, scale)
    xs_ref[...] = x

    @pl.when(layer == depth - 1)
    def _():
        y = _layernorm(x, nw[...], nb[...])                         # decoder_norm
        pred = jnp.dot(y.astype(jnp.bfloat16), pw[...],             # decoder_pred (lane-padded to 128)
                       preferred_element_type=jnp.float32) + pb[...]
        pred_ref[0] = pred.astype(pred_ref.dtype)
        # Fused masked-MSE numerator for this sample.  Lane-padded pred columns
        # and target columns are exactly zero so they cancel; the cls row is
        # removed by mask==0.  The mask enters as a lane vector (1, n_dec) and
        # the row x column reduction is a tiny matmul (no 1-lane VMEM input).
        diff = pred - tgt_ref[0]
        wsum = jnp.dot(msk_ref[0], diff * diff,
                       preferred_element_type=jnp.float32)          # (1, P_pad)
        num_ref[0] = jnp.sum(wsum, axis=-1, keepdims=True) * (1.0 / pred_dim)


# ----------------------------------------------------------------------------
# Parameter init (mirrors module __init__ / init_weights shapes)
# ----------------------------------------------------------------------------
def xavier_normal(key, din, dout):
    std = (2.0 / (din + dout)) ** 0.5
    return jax.random.normal(key, (din, dout), jnp.float32) * std


def init_block(key, dim, heads, dim_head, mlp_ratio):
    inner = heads * dim_head
    hidden = dim * mlp_ratio
    ks = jax.random.split(key, 4)
    return dict(
        ln1_w=jnp.ones((dim,), jnp.float32), ln1_b=jnp.zeros((dim,), jnp.float32),
        wqkv=xavier_normal(ks[0], dim, 3 * inner),           # to_qkv (no bias)
        wout=xavier_normal(ks[1], inner, dim),
        bout=jnp.zeros((dim,), jnp.float32),
        ln2_w=jnp.ones((dim,), jnp.float32), ln2_b=jnp.zeros((dim,), jnp.float32),
        w1=xavier_normal(ks[2], dim, hidden), b1=jnp.zeros((hidden,), jnp.float32),
        w2=xavier_normal(ks[3], hidden, dim), b2=jnp.zeros((dim,), jnp.float32),
    )


def init_params(key, cfg):
    L = cfg["num_patches"]
    dim, ddim = cfg["dim"], cfg["decoder_dim"]
    patch_dim = cfg["channels"] * cfg["patch_size"] ** 2
    pred_dim = cfg["patch_size"] ** 2 * cfg["in_chans"]
    keys = jax.random.split(key, 8 + cfg["depth"] + cfg["decoder_depth"])
    p = dict(
        patch_w=xavier_normal(keys[0], patch_dim, dim),
        patch_b=jnp.zeros((dim,), jnp.float32),
        pos_embedding=jnp.zeros((1, L + 1, dim), jnp.float32),       # frozen zeros
        cls_token=jax.random.normal(keys[1], (1, 1, dim), jnp.float32),
        enc_norm_w=jnp.ones((dim,), jnp.float32),
        enc_norm_b=jnp.zeros((dim,), jnp.float32),
        dec_embed_w=xavier_normal(keys[2], dim, ddim),
        dec_embed_b=jnp.zeros((ddim,), jnp.float32),
        mask_token=jnp.zeros((1, 1, ddim), jnp.float32),
        decoder_pos_embed=jnp.zeros((1, L + 1, ddim), jnp.float32),  # frozen zeros
        dec_norm_w=jnp.ones((ddim,), jnp.float32),
        dec_norm_b=jnp.zeros((ddim,), jnp.float32),
        dec_pred_w=xavier_normal(keys[3], ddim, pred_dim),
        dec_pred_b=jnp.zeros((pred_dim,), jnp.float32),
    )
    p["enc_blocks"] = [init_block(keys[4 + i], dim, cfg["heads"], cfg["dim_head"],
                                  cfg["mlp_dim_ratio"]) for i in range(cfg["depth"])]
    p["dec_blocks"] = [init_block(keys[4 + cfg["depth"] + i], ddim,
                                  cfg["decoder_heads"], cfg["dim_head"],
                                  cfg["mlp_dim_ratio"])
                       for i in range(cfg["decoder_depth"])]
    return p


# ----------------------------------------------------------------------------
# Wrapper-side weight preparation (stack over layers; bf16 MXU operands)
# ----------------------------------------------------------------------------
def stack_block_weights(blocks):
    # TODO(synk): on v7x, cast wqkv/w1/w2 to fp8 (v7x MXU supports fp8) to
    # halve weight DMA + VMEM residency; keep bf16 on v5e/v6e.
    dim = blocks[0]["wqkv"].shape[0]

    def st(f, dtype=None):
        a = jnp.stack([f(b) for b in blocks], axis=0)
        return a.astype(dtype) if dtype is not None else a

    return dict(
        ln1w=st(lambda b: b["ln1_w"].reshape(1, dim)),
        ln1b=st(lambda b: b["ln1_b"].reshape(1, dim)),
        wqkv=st(lambda b: b["wqkv"], jnp.bfloat16),           # fused (D, 3*H*dh)
        wo=st(lambda b: b["wout"], jnp.bfloat16),             # (H*dh, D)
        bo=st(lambda b: b["bout"].reshape(1, dim)),
        ln2w=st(lambda b: b["ln2_w"].reshape(1, dim)),
        ln2b=st(lambda b: b["ln2_b"].reshape(1, dim)),
        w1=st(lambda b: b["w1"], jnp.bfloat16),
        b1=st(lambda b: b["b1"].reshape(1, -1)),
        w2=st(lambda b: b["w2"], jnp.bfloat16),
        b2=st(lambda b: b["b2"].reshape(1, dim)),
    )


def _layer_specs(stacked):
    # Per-layer weight streaming: block = one layer's slice of each stacked
    # array, index_map picks layer `l`; Pallas double-buffers the DMA.
    # TODO(synk): on v5e add pipeline_mode=pl.Buffered(3) to wqkv/w1/w2 to hide
    # the slower HBM behind compute.
    return [pl.BlockSpec((1,) + stacked[k].shape[1:], lambda b, l: (l, 0, 0))
            for k in _BLOCK_KEYS]


def _shared_spec(shape):
    # Small non-layer weights: loaded once, constant index across the grid.
    return pl.BlockSpec(shape, lambda b, l: (0, 0))


# ----------------------------------------------------------------------------
# Forward pass (encoder + decoder + loss)
# ----------------------------------------------------------------------------
def patchify(imgs, p):
    # 'b c (h p1) (w p2) -> b (h w) (p1 p2 c)'
    B, C, H, W = imgs.shape
    h, w = H // p, W // p
    x = imgs.reshape(B, C, h, p, w, p)
    x = jnp.transpose(x, (0, 2, 4, 3, 5, 1))      # b h w p1 p2 c
    return x.reshape(B, h * w, p * p * C)


def forward_mae(params, imgs, mask_key, mask_ratio, cfg):
    p = cfg["patch_size"]
    dim, ddim = cfg["dim"], cfg["decoder_dim"]
    heads, dheads, dh = cfg["heads"], cfg["decoder_heads"], cfg["dim_head"]
    depth, ddepth = cfg["depth"], cfg["decoder_depth"]
    B = imgs.shape[0]
    L = cfg["num_patches"]
    pred_dim = p * p * cfg["in_chans"]
    p_pad = max(128, ((pred_dim + 127) // 128) * 128)   # lane-dense pred stores
    scale = dh ** -0.5

    # -------- 1) patch embedding + encoder pos add (grid over batch) --------
    patches = patchify(imgs, p)                                   # (B, L, patch_dim)
    patch_dim = patches.shape[-1]
    tokens = pl.pallas_call(
        patch_embed_kernel,
        out_shape=jax.ShapeDtypeStruct((B, L, dim), jnp.float32),
        grid_spec=pltpu.PrefetchScalarGridSpec(
            num_scalar_prefetch=0, grid=(B,),
            in_specs=[pl.BlockSpec((1, L, patch_dim), lambda b: (b, 0, 0)),
                      pl.BlockSpec((patch_dim, dim), lambda b: (0, 0)),
                      pl.BlockSpec((1, dim), lambda b: (0, 0)),
                      pl.BlockSpec((L, dim), lambda b: (0, 0))],
            out_specs=pl.BlockSpec((1, L, dim), lambda b: (b, 0, 0))),
        compiler_params=_compiler_params(("parallel",)),
    )(patches,
      params["patch_w"].astype(jnp.bfloat16),
      params["patch_b"].reshape(1, dim),
      params["pos_embedding"][0, 1:, :])                          # (L, dim), no HBM broadcast

    # -------- random masking (plain-JAX glue: argsort + gathers) ------------
    len_keep = int(L * (1.0 - mask_ratio))
    noise = jax.random.uniform(mask_key, (B, L))
    ids_shuffle = jnp.argsort(noise, axis=1)
    ids_restore = jnp.argsort(ids_shuffle, axis=1)
    ids_keep = ids_shuffle[:, :len_keep]
    x_masked = jnp.take_along_axis(tokens, ids_keep[:, :, None], axis=1)
    mask = jnp.ones((B, L), jnp.float32).at[:, :len_keep].set(0.0)
    mask = jnp.take_along_axis(mask, ids_restore, axis=1)

    cls = jnp.broadcast_to(params["cls_token"], (B, 1, dim))
    x_enc = jnp.concatenate([cls, x_masked], axis=1)              # (B, n_enc, dim)
    n_enc = len_keep + 1

    # -------- 2) fused encoder: layer grid + final norm + decoder_embed -----
    eb = stack_block_weights(params["enc_blocks"])
    enc_in_specs = (
        [pl.BlockSpec((1, n_enc, dim), lambda b, l: (b, 0, 0))]
        + _layer_specs(eb)
        + [_shared_spec((1, dim)), _shared_spec((1, dim)),
           _shared_spec((dim, ddim)), _shared_spec((1, ddim))])
    latent = pl.pallas_call(
        functools.partial(encoder_kernel, depth=depth, heads=heads,
                          dim_head=dh, scale=scale),
        out_shape=jax.ShapeDtypeStruct((B, n_enc, ddim), jnp.bfloat16),
        grid_spec=pltpu.PrefetchScalarGridSpec(
            num_scalar_prefetch=0, grid=(B, depth),
            in_specs=enc_in_specs,
            out_specs=pl.BlockSpec((1, n_enc, ddim), lambda b, l: (b, 0, 0)),
            scratch_shapes=[pltpu.VMEM((n_enc, dim), jnp.float32)]),
        compiler_params=_compiler_params(("parallel", "arbitrary")),
    )(x_enc,
      *[eb[k] for k in _BLOCK_KEYS],
      params["enc_norm_w"].reshape(1, dim), params["enc_norm_b"].reshape(1, dim),
      params["dec_embed_w"].astype(jnp.bfloat16),
      params["dec_embed_b"].reshape(1, ddim))

    # -------- decoder token assembly (plain-JAX glue) ------------------------
    n_dec = L + 1
    mask_tokens = jnp.broadcast_to(params["mask_token"].astype(jnp.bfloat16),
                                   (B, n_dec - n_enc, ddim))
    x_ = jnp.concatenate([latent[:, 1:, :], mask_tokens], axis=1)   # (B, L, ddim)
    x_ = jnp.take_along_axis(x_, ids_restore[:, :, None], axis=1)   # unshuffle
    x_dec = jnp.concatenate([latent[:, :1, :], x_], axis=1)         # (B, L+1, ddim), bf16

    # -------- 3) fused decoder: pos + layer grid + norm + pred + loss --------
    target = patchify(imgs, p)                                      # norm_pix_loss=False
    tgt = jnp.concatenate([jnp.zeros((B, 1, pred_dim), jnp.float32), target], axis=1)
    tgt = jnp.pad(tgt, ((0, 0), (0, 0), (0, p_pad - pred_dim)))     # lane pad (exact zeros)
    loss_mask = jnp.concatenate([jnp.zeros((B, 1), jnp.float32), mask],
                                axis=1).reshape(B, 1, n_dec)        # lane vector per sample

    db = stack_block_weights(params["dec_blocks"])
    pw = jnp.pad(params["dec_pred_w"], ((0, 0), (0, p_pad - pred_dim)))
    pb = jnp.pad(params["dec_pred_b"], (0, p_pad - pred_dim)).reshape(1, p_pad)
    dec_in_specs = (
        [pl.BlockSpec((1, n_dec, ddim), lambda b, l: (b, 0, 0)),
         pl.BlockSpec((n_dec, ddim), lambda b, l: (0, 0)),
         pl.BlockSpec((1, n_dec, p_pad), lambda b, l: (b, 0, 0)),
         pl.BlockSpec((1, 1, n_dec), lambda b, l: (b, 0, 0))]
        + _layer_specs(db)
        + [_shared_spec((1, ddim)), _shared_spec((1, ddim)),
           _shared_spec((ddim, p_pad)), _shared_spec((1, p_pad))])
    pred_pad, num = pl.pallas_call(
        functools.partial(decoder_kernel, depth=ddepth, heads=dheads,
                          dim_head=dh, scale=scale, pred_dim=pred_dim),
        out_shape=(jax.ShapeDtypeStruct((B, n_dec, p_pad), jnp.float32),
                   jax.ShapeDtypeStruct((B, 1, 1), jnp.float32)),
        grid_spec=pltpu.PrefetchScalarGridSpec(
            num_scalar_prefetch=0, grid=(B, ddepth),
            in_specs=dec_in_specs,
            out_specs=(pl.BlockSpec((1, n_dec, p_pad), lambda b, l: (b, 0, 0)),
                       pl.BlockSpec((1, 1, 1), lambda b, l: (b, 0, 0))),
            scratch_shapes=[pltpu.VMEM((n_dec, ddim), jnp.float32)]),
        compiler_params=_compiler_params(("parallel", "arbitrary")),
    )(x_dec,
      params["decoder_pos_embed"][0],                              # (n_dec, ddim)
      tgt,
      loss_mask,
      *[db[k] for k in _BLOCK_KEYS],
      params["dec_norm_w"].reshape(1, ddim), params["dec_norm_b"].reshape(1, ddim),
      pw.astype(jnp.bfloat16), pb)

    pred = pred_pad[:, 1:, :pred_dim]                              # drop cls + lane padding
    # Final scalar combine (per-sample numerators / total mask count); matches
    # the reference exactly, including the mask_ratio=0 -> NaN edge case.
    loss = jnp.sum(num) / jnp.sum(mask)
    return loss, pred


# ----------------------------------------------------------------------------
if __name__ == "__main__":
    cfg = dict(img_size=16, patch_size=4, channels=3, in_chans=3,
               dim=32, depth=2, heads=4, dim_head=16, mlp_dim_ratio=2,
               decoder_depth=1, decoder_heads=4, decoder_dim=32)
    cfg["num_patches"] = (cfg["img_size"] // cfg["patch_size"]) ** 2     # 16

    key = jax.random.PRNGKey(0)
    k_param, k_img, k_mask = jax.random.split(key, 3)

    params = init_params(k_param, cfg)
    imgs = jax.random.normal(k_img, (2, 3, 16, 16), jnp.float32)         # NCHW

    loss, pred = forward_mae(params, imgs, k_mask, mask_ratio=0.75, cfg=cfg)
    jax.block_until_ready((loss, pred))
    assert pred.shape == (2, cfg["num_patches"],
                          cfg["patch_size"] ** 2 * cfg["in_chans"])
    print("KERNEL_OK")
</pallas_src>

<mosaic_0001>
module attributes {stable_mosaic.version = 11 : i64} {
  func.func @patch_embed_kernel(%arg0: i32, %arg1: memref<1x16x48xf32, #tpu.memory_space<vmem>>, %arg2: memref<48x32xbf16, #tpu.memory_space<vmem>>, %arg3: memref<1x32xf32, #tpu.memory_space<vmem>>, %arg4: memref<16x32xf32, #tpu.memory_space<vmem>>, %arg5: memref<1x16x32xf32, #tpu.memory_space<vmem>>) attributes {dimension_semantics = [#tpu.dimension_semantics<parallel>], iteration_bounds = array<i64: 2>, scalar_prefetch = 0 : i64, scratch_operands = 0 : i64, tpu.core_type = #tpu.core_type<tc>, window_params = [{transform_indices = @transform_0, window_bounds = array<i64: 1, 16, 48>}, {pipeline_mode = #tpu.pipeline_mode<synchronous>, transform_indices = @transform_1, window_bounds = array<i64: 48, 32>}, {pipeline_mode = #tpu.pipeline_mode<synchronous>, transform_indices = @transform_2, window_bounds = array<i64: 1, 32>}, {pipeline_mode = #tpu.pipeline_mode<synchronous>, transform_indices = @transform_3, window_bounds = array<i64: 16, 32>}, {transform_indices = @transform_4, window_bounds = array<i64: 1, 16, 32>}]} {
    %c0 = arith.constant 0 : index
    %c0_0 = arith.constant 0 : index
    %c0_1 = arith.constant 0 : index
    %0 = vector.load %arg1[%c0, %c0_0, %c0_1] : memref<1x16x48xf32, #tpu.memory_space<vmem>>, vector<1x16x48xf32>
    %1 = vector.shape_cast %0 : vector<1x16x48xf32> to vector<16x48xf32>
    %2 = arith.truncf %1 : vector<16x48xf32> to vector<16x48xbf16>
    %c0_2 = arith.constant 0 : index
    %c0_3 = arith.constant 0 : index
    %3 = vector.load %arg2[%c0_2, %c0_3] : memref<48x32xbf16, #tpu.memory_space<vmem>>, vector<48x32xbf16>
    %cst = arith.constant dense<0.000000e+00> : vector<16x32xf32>
    %4 = tpu.matmul %2, %3, %cst {dimension_numbers = #tpu.dot_dimension_numbers<[1], [0], [0], [1], [0, 0, 1, 1], [], []>} : vector<16x48xbf16>, vector<48x32xbf16>, vector<16x32xf32> -> vector<16x32xf32>
    %c0_4 = arith.constant 0 : index
    %c0_5 = arith.constant 0 : index
    %5 = vector.load %arg3[%c0_4, %c0_5] : memref<1x32xf32, #tpu.memory_space<vmem>>, vector<1x32xf32>
    %6 = vector.broadcast %5 : vector<1x32xf32> to vector<16x32xf32>
    %7 = arith.addf %4, %6 : vector<16x32xf32>
    %c0_6 = arith.constant 0 : index
    %c0_7 = arith.constant 0 : index
    %8 = vector.load %arg4[%c0_6, %c0_7] : memref<16x32xf32, #tpu.memory_space<vmem>>, vector<16x32xf32>
    %9 = arith.addf %7, %8 : vector<16x32xf32>
    %c0_8 = arith.constant 0 : index
    %c0_9 = arith.constant 0 : index
    %c0_10 = arith.constant 0 : index
    %10 = vector.load %arg5[%c0_8, %c0_9, %c0_10] : memref<1x16x32xf32, #tpu.memory_space<vmem>>, vector<1x16x32xf32>
    %11 = vector.shape_cast %10 : vector<1x16x32xf32> to vector<16x32xf32>
    %12 = vector.shape_cast %9 : vector<16x32xf32> to vector<1x16x32xf32>
    tpu.vector_store %arg5[%c0_8, %c0_9, %c0_10], %12 {strides = array<i32>} : memref<1x16x32xf32, #tpu.memory_space<vmem>>, vector<1x16x32xf32>,
    return
  }
  func.func @transform_0(%arg0: i32) -> (i32, i32, i32) {
    %c0_i32 = arith.constant 0 : i32
    %c0_i32_0 = arith.constant 0 : i32
    %c0_i32_1 = arith.constant 0 : i32
    return %arg0, %c0_i32, %c0_i32_0 : i32, i32, i32
  }
  func.func @transform_1(%arg0: i32) -> (i32, i32) {
    %c0_i32 = arith.constant 0 : i32
    %c0_i32_0 = arith.constant 0 : i32
    %c0_i32_1 = arith.constant 0 : i32
    return %c0_i32, %c0_i32_0 : i32, i32
  }
  func.func @transform_2(%arg0: i32) -> (i32, i32) {
    %c0_i32 = arith.constant 0 : i32
    %c0_i32_0 = arith.constant 0 : i32
    %c0_i32_1 = arith.constant 0 : i32
    return %c0_i32, %c0_i32_0 : i32, i32
  }
  func.func @transform_3(%arg0: i32) -> (i32, i32) {
    %c0_i32 = arith.constant 0 : i32
    %c0_i32_0 = arith.constant 0 : i32
    %c0_i32_1 = arith.constant 0 : i32
    return %c0_i32, %c0_i32_0 : i32, i32
  }
  func.func @transform_4(%arg0: i32) -> (i32, i32, i32) {
    %c0_i32 = arith.constant 0 : i32
    %c0_i32_0 = arith.constant 0 : i32
    %c0_i32_1 = arith.constant 0 : i32
    return %arg0, %c0_i32, %c0_i32_0 : i32, i32, i32
  }
}

</mosaic_0001>

<bundles_post_ra>
// kernel: tpu_custom_call.1
= control target key start
LH: loop header
LB: loop body
LE: loop exit
PB: predicated region body
PF: predicated region fallthrough
CT: control target
= control target key end

     0   :  { %9 = vsyncpa [#allocation3], 0  ;;  %s682_s0 = inlined_call_operand.vmem [shape: f32[2,16,48], index: 0, kind: input, shape index: {}]   ;;  %s683_s1 = inlined_call_operand.vmem [shape: bf16[48,32], index: 1, kind: input, shape index: {}]   ;;  %s684_s2 = inlined_call_operand.vmem [shape: f32[1,32], index: 2, kind: input, shape index: {}]   ;;  %s685_s3 = inlined_call_operand.hbm [shape: f32[16,32], index: 3, kind: input, shape index: {}]   ;;  %s686_s4 = inlined_call_operand.hbm [shape: f32[2,16,32], index: 4, kind: output, shape index: {}]  }
   0x1   :  { %10 = vsyncpa [#allocation4], 0 }
   0x2   :  { %12 = vsyncpa [#allocation4 + $0x1], 0  ;;  %s575_s15 = smov 0   ;;  %s577_s16 = smov 0  }
   0x3   :  { %s579_s17 = smov 0   ;;  %s581_s18 = smov 0  }
   0x4 LB: > { %s596_s19 = sadd.s32 4294967295, %s543_s18   ;;  %s360_s20 = sadd.s32 4294967294, %s543_s18   ;;  %s543_s18 = sphi %s581_s18, %s692_s18   ;;  %s539_s17 = sphi %s579_s17, %s691_s17   ;;  %s535_s16 = sphi %s577_s16, %s690_s16   ;;  %s531_s15 = sphi %s575_s15, %s689_s15  }
   0x5   : > { %s600_s21 = sadd.s32 1, %s543_s18   ;;  %s114_s22 = sadd.s32 1, %s539_s17 }
   0x6   : > { %s111_s23 = ssub.s32 %s543_s18, %s600_s21  ;;  %p124_p0 = scmp.ne.s32.totalorder %s539_s17, %s535_s16 }
   0x7   : > { %p112_p1 = scmp.eq.s32.totalorder %s111_s23, 0  ;;  %p125_p2 = scmp.eq.s32.totalorder %s596_s19, 1 }
   0x8   : > { %p130_p3 = scmp.ne.s32.totalorder %s535_s16, %s531_s15  ;;  %p131_p4 = scmp.eq.s32.totalorder %s360_s20, 1 }
   0x9   : > { %s611_s24 = scalar_select %p112_p1, %s539_s17, %s114_s22  }
   0xa   : > { %p613_p5 = por %p125_p2, %p124_p0  ;;  %p617_p6 = por %p131_p4, %p130_p3 }
   0xb   : > { %p361_p7 = scmp.ge.s32.totalorder %s543_s18, 1  ;;  %p138_p8 = scmp.lt.s32.totalorder %s543_s18, 3 }
   0xc   : > { %p406_p9 = scmp.eq.s32.totalorder %s596_s19, 0  ;;  %s155_s29 = sshll.u32 %s685_s3, 4  ;;  %s156_s29 = int_to_ptr.hbm [resolvable:$true] %s155_s29 }
   0xd   : > { %p139_p10 = pnand %p361_p7, %p138_p8  ;;  %s545_s30 = smov [#allocation2]  }
   0xe   : > { %s157_s5 = sshll.u32 %s545_s30, 4  ;;  %s546_s6 = smov 128   ;;  %s158_s5 = int_to_ptr.vmem [resolvable:$true] %s157_s5 }
   0xf   : > { %p398_p11 = pneg %p139_p10  ;;  %s547_s7 = smov 8  }
  0x10   : > { %181 = sbr.rel (%p139_p10) target bundleno = 176 (0xb0), region = 36 }
  0x11   : > { %p399_p12 = pnand %p406_p9, %p398_p11 }
  0x13   : > { %401 = dma.hbm_to_vmem [thread:$0]  (!%p399_p12), %s156_s29, 256, %s158_s5, [#allocation3], %s546_s6, %s546_s6, %s547_s7  }
  0x15   : > { %522 = dma.done.wait (%p406_p9), [#allocation3], 256  }
  0x16   : > { %524 = vsyncadd (%p406_p9), [#allocation3], 4294967040  ;;  %p208_p13 = scmp.lt.s32.totalorder %s596_s19, 1  ;;  %v390_v0 = vld [vmem:[%s683_s1 + $0x10] sm:$0xff]  ;;  %v389_v1 = vld [vmem:[%s683_s1 + $0x8] sm:$0xff]  ;;  %vm245_vm0 = vcmask 392192  }
  0x17   : > { %254 = vmatpush.bf16.msra.mxu0 %v390_v0  ;;  %v388_v2 = vld [vmem:[%s683_s1] sm:$0xff]  ;;  %s205_s28 = sand.u32 1, %s535_s16   ;;  %s391_s6 = sshll.u32 %s596_s19, 4  ;;  %vm267_vm1 = vcmask 261120   ;;  %v264_v12 = vld [vmem:[#allocation2 + $0x8] sm:$0xff] }
  0x18   : > { %s209_s8 = scalar_select %p208_p13, %s596_s19, 1  ;;  %v446_v6 = vld [vmem:[%s684_s2] ss:$0 sm:$0xff] }
  0x19   : > { %s366_s5 = sshll.u32 %s205_s28, 4  ;;  %v263_v8 = vld [vmem:[#allocation2] sm:$0xff]  ;;  %s282_s9 = scalar_lea.hbm %s686_s4, %s391_s6 }
  0x1a   : > { %s387_s11 = sshll.u32 %s209_s8, 4  ;;  %s207_s10 = scalar_lea.vmem [#allocation5], %s366_s5 }
  0x1b   : > { %s212_s22 = scalar_lea.vmem %s682_s0, %s387_s11  ;;  %255 = vmatpush.bf16.msra.mxu0 %v389_v1  ;;  %s283_s11 = sshll.u32 %s207_s10, 4  ;;  %s284_s11 = int_to_ptr.vmem [resolvable:$true] %s283_s11 }
  0x1c   : > { %v214_v3 = vld [vmem:[%s212_s22] sm:$0xff]  ;;  %v215_v4 = vld [vmem:[%s212_s22 + $0x8] sm:$0xff]  ;;  %s285_s12 = sshll.u32 %s282_s9, 4  ;;  %s271_s13 = scalar_lea.sflag [#allocation4], %s205_s28  ;;  %s286_s12 = int_to_ptr.hbm [resolvable:$true] %s285_s12 }
  0x1d   : > { %v216_v5 = vpack.c.bf16 %v215_v4, %v214_v3  ;;  %s491_s19 = sshra.s32 %s286_s12, 4  ;;  %s497_s23 = scalar_lea.hbm %s686_s4, 32  ;;  %s492_s19 = int_to_ptr.hbm [resolvable:$true] %s491_s19 }
  0x1e   : > { %s493_s14 = scalar_lea.hbm %s492_s19, 16  ;;  %p498_p3 = scmp.lt.s32.totalorder %s492_s19, %s686_s4 }
  0x1f   : > { %256 = vmatpush.bf16.msra.mxu0 %v388_v2  ;;  %p494_p0 = scmp.ne.s32.totalorder %s492_s19, %s493_s14  ;;  %p499_p4 = scmp.lt.s32.totalorder %s497_s23, %s493_s14 }
  0x21   : > { %p495_p1 = pnand %p494_p0, %p613_p5  ;;  %p500_p7 = por %p499_p4, %p498_p3 }
  0x22   : > { %381 = vmatmul.msk.bf16.vlgmr.msra.gmra.mxu0 %vm245_vm0, %v216_v5 }
  0x23   : > { %p496_p2 = pneg %p495_p1 }
  0x25   : > { %p501_p8 = pnand %p500_p7, %p496_p2 }
  0x9f   : > { %v258_v7 = vpop.f32.mrf.mxu0 }
  0xa0   : > { %v259_v9 = vadd.f32 %v446_v6, %v258_v7 }
  0xa2   : > { %v265_v10 = vadd.f32 %v263_v8, %v259_v9 }
  0xa4   : > { %268 = vst.msk [vmem:[%s207_s10] sm:$0xff] %vm267_vm1, %v265_v10 }
  0xa7   : > { %v260_v11 = vpop.f32.mrf.mxu0 }
  0xa8   : > { %v261_v13 = vadd.f32 %v446_v6, %v260_v11 }
  0xaa   : > { %v266_v14 = vadd.f32 %v264_v12, %v261_v13 }
  0xac   : > { %269 = vst.msk [vmem:[%s207_s10 + $0x8] sm:$0xff] %vm267_vm1, %v266_v14 }
  0xad   : > { %504 = shalt.err (!%p501_p8)
}
  0xae   : > { %s548_s28 = smov 128   ;;  %s549_s30 = smov 8  }
  0xaf   : > { %396 = dma.vmem_to_hbm [thread:$0]  (%p613_p5), %s284_s11, 256, %s286_s12, %s271_s13, %s548_s28, %s548_s28, %s549_s30  }
  0xb0 PF: > { %p408_p9 = scmp.ge.s32.totalorder %s543_s18, 2  ;;  %s300_s5 = sand.u32 1, %s531_s15  }
  0xb1   : > { %s301_s6 = scalar_lea.sflag [#allocation4], %s300_s5 }
  0xb2   : > { %p403_p10 = pnand %p408_p9, %p617_p6 }
  0xb4   : > { %p404_p11 = pneg %p403_p10 }
  0xb6   : > { %526 = dma.done.wait (%p404_p11), %s301_s6, 256  }
  0xb7   : > { %528 = vsyncadd (%p404_p11), %s301_s6, 4294967040  ;;  %p15_p12 = scmp.ge.s32.totalorder %s600_s21, 4   ;;  %s689_s15 = smov %s535_s16 }
  0xb8   : > { %s690_s16 = smov %s539_s17  ;;  %s691_s17 = smov %s611_s24 }
  0xb9   : > { %s692_s18 = smov %s600_s21  ;;  %17 = sbr.rel (!%p15_p12) target bundleno = 4 (0x4), region = 76 }
  0xbe   :  { %307 = vsyncpa [#allocation3], 1 }
  0xbf   :  { %309 = vsyncpa [#allocation3 + $0x1], 1 }
  0xc0   :  { %310 = vsyncpa [#allocation4], 1 }
  0xc1   :  { %312 = vsyncpa [#allocation4 + $0x1], 1 }

</bundles_post_ra>
